<compile_context>
chip_gen: v7x
topology: tpu7x:2x2x1
jax: 0.10.0
libtpu: 0.0.40
codegen_flags: <defaults>
</compile_context>

<pallas_src>
import functools

import jax
import jax.numpy as jnp
from jax.experimental import pallas as pl
from jax.experimental.pallas import tpu as pltpu

VMEM_LIMIT = 32 * 1024 * 1024   # explicit scoped-VMEM request (safe on v5e/v6e/v7x)
ROW_TILE = 512                  # row tile for row-wise fused kernels (multiple of 8)


def _prod(xs):
    r = 1
    for x in xs:
        r *= int(x)
    return r


def _row_tile(rows, cap=ROW_TILE):
    return rows if rows <= cap else cap


def _compiler_params(semantics):
    return pltpu.CompilerParams(dimension_semantics=semantics,
                                vmem_limit_bytes=VMEM_LIMIT)


def _ln_f32(x, gamma_ref, beta_ref):
    """LayerNorm over the last dim; statistics kept in f32 (eps matches PyTorch)."""
    x = x.astype(jnp.float32)
    mu = jnp.mean(x, axis=-1, keepdims=True)
    var = jnp.mean(jnp.square(x - mu), axis=-1, keepdims=True)
    xn = (x - mu) * jax.lax.rsqrt(var + 1e-5)
    return xn * gamma_ref[...] + beta_ref[...]


# ----------------------------------------------------------------------------
# Fused LayerNorm + (multi-output) Linear
# ----------------------------------------------------------------------------

def _ln_multilinear_kernel(x_ref, g_ref, b_ref, w_ref, wb_ref, *o_refs,
                           widths, activations):
    xn = _ln_f32(x_ref[...], g_ref, b_ref)
    y = jnp.dot(xn.astype(jnp.bfloat16), w_ref[...].astype(jnp.bfloat16),
                preferred_element_type=jnp.float32) + wb_ref[...]
    off = 0
    for o_ref, wd, act in zip(o_refs, widths, activations):
        z = y[:, off:off + wd]
        off += wd
        if act == "gelu":
            z = jax.nn.gelu(z)
        elif act == "sigmoid":
            z = jax.nn.sigmoid(z)
        o_ref[...] = z.astype(o_ref.dtype)


@functools.partial(jax.jit, static_argnames=("widths", "activations"))
def pallas_ln_multilinear(x, gamma, beta, w, wb, *, widths, activations):
    shp = x.shape
    d = shp[-1]
    rows = _prod(shp[:-1])
    total = int(sum(widths))
    x2 = x.reshape(rows, d)
    tr = _row_tile(rows)
    grid = (pl.cdiv(rows, tr),)
    outs = pl.pallas_call(
        functools.partial(_ln_multilinear_kernel, widths=widths, activations=activations),
        out_shape=tuple(jax.ShapeDtypeStruct((rows, wd), x.dtype) for wd in widths),
        grid_spec=pltpu.PrefetchScalarGridSpec(
            num_scalar_prefetch=0, grid=grid,
            in_specs=[pl.BlockSpec((tr, d), lambda i: (i, 0)),
                      pl.BlockSpec((1, d), lambda i: (0, 0)),
                      pl.BlockSpec((1, d), lambda i: (0, 0)),
                      pl.BlockSpec((d, total), lambda i: (0, 0)),
                      pl.BlockSpec((1, total), lambda i: (0, 0))],
            out_specs=tuple(pl.BlockSpec((tr, wd), lambda i: (i, 0)) for wd in widths)),
        compiler_params=_compiler_params(("parallel",)),
    )(x2, gamma.reshape(1, d), beta.reshape(1, d), w, wb.reshape(1, total))
    if not isinstance(outs, (tuple, list)):
        outs = (outs,)
    return tuple(o.reshape(shp[:-1] + (wd,)) for o, wd in zip(outs, widths))


# ----------------------------------------------------------------------------
# Fused transition block: out = x + W2 @ gelu(W1 @ LN(x))
# ----------------------------------------------------------------------------

def _transition_kernel(x_ref, g_ref, b_ref, w1_ref, b1_ref, w2_ref, b2_ref, o_ref):
    x = x_ref[...].astype(jnp.float32)
    xn = _ln_f32(x, g_ref, b_ref)
    h = jnp.dot(xn.astype(jnp.bfloat16), w1_ref[...].astype(jnp.bfloat16),
                preferred_element_type=jnp.float32) + b1_ref[...]
    h = jax.nn.gelu(h)
    y = jnp.dot(h.astype(jnp.bfloat16), w2_ref[...].astype(jnp.bfloat16),
                preferred_element_type=jnp.float32) + b2_ref[...]
    o_ref[...] = (x + y).astype(o_ref.dtype)


@jax.jit
def pallas_transition(x, gamma, beta, w1, b1, w2, b2):
    shp = x.shape
    d = shp[-1]
    hdim = w1.shape[1]
    rows = _prod(shp[:-1])
    x2 = x.reshape(rows, d)
    tr = _row_tile(rows)
    grid = (pl.cdiv(rows, tr),)
    out = pl.pallas_call(
        _transition_kernel,
        out_shape=jax.ShapeDtypeStruct((rows, d), x.dtype),
        grid_spec=pltpu.PrefetchScalarGridSpec(
            num_scalar_prefetch=0, grid=grid,
            in_specs=[pl.BlockSpec((tr, d), lambda i: (i, 0)),
                      pl.BlockSpec((1, d), lambda i: (0, 0)),
                      pl.BlockSpec((1, d), lambda i: (0, 0)),
                      pl.BlockSpec((d, hdim), lambda i: (0, 0)),
                      pl.BlockSpec((1, hdim), lambda i: (0, 0)),
                      pl.BlockSpec((hdim, d), lambda i: (0, 0)),
                      pl.BlockSpec((1, d), lambda i: (0, 0))],
            out_specs=pl.BlockSpec((tr, d), lambda i: (i, 0))),
        compiler_params=_compiler_params(("parallel",)),
    )(x2, gamma.reshape(1, d), beta.reshape(1, d), w1, b1.reshape(1, hdim),
      w2, b2.reshape(1, d))
    return out.reshape(shp)


# ----------------------------------------------------------------------------
# Linear with fused residual (optionally gated input)
# ----------------------------------------------------------------------------

def _linear_residual_kernel(x_ref, r_ref, w_ref, b_ref, o_ref):
    y = jnp.dot(x_ref[...].astype(jnp.bfloat16), w_ref[...].astype(jnp.bfloat16),
                preferred_element_type=jnp.float32) + b_ref[...]
    o_ref[...] = (r_ref[...].astype(jnp.float32) + y).astype(o_ref.dtype)


def _gated_linear_residual_kernel(x_ref, g_ref, r_ref, w_ref, b_ref, o_ref):
    xg = (x_ref[...].astype(jnp.float32) * g_ref[...].astype(jnp.float32)).astype(jnp.bfloat16)
    y = jnp.dot(xg, w_ref[...].astype(jnp.bfloat16),
                preferred_element_type=jnp.float32) + b_ref[...]
    o_ref[...] = (r_ref[...].astype(jnp.float32) + y).astype(o_ref.dtype)


@jax.jit
def pallas_linear_residual(x, res, w, b):
    shp = res.shape
    din, dout = x.shape[-1], w.shape[1]
    rows = _prod(shp[:-1])
    x2, r2 = x.reshape(rows, din), res.reshape(rows, dout)
    tr = _row_tile(rows)
    grid = (pl.cdiv(rows, tr),)
    out = pl.pallas_call(
        _linear_residual_kernel,
        out_shape=jax.ShapeDtypeStruct((rows, dout), res.dtype),
        grid_spec=pltpu.PrefetchScalarGridSpec(
            num_scalar_prefetch=0, grid=grid,
            in_specs=[pl.BlockSpec((tr, din), lambda i: (i, 0)),
                      pl.BlockSpec((tr, dout), lambda i: (i, 0)),
                      pl.BlockSpec((din, dout), lambda i: (0, 0)),
                      pl.BlockSpec((1, dout), lambda i: (0, 0))],
            out_specs=pl.BlockSpec((tr, dout), lambda i: (i, 0))),
        compiler_params=_compiler_params(("parallel",)),
    )(x2, r2, w, b.reshape(1, dout))
    return out.reshape(shp)


@jax.jit
def pallas_gated_linear_residual(x, gate, res, w, b):
    shp = res.shape
    din, dout = x.shape[-1], w.shape[1]
    rows = _prod(shp[:-1])
    x2, g2, r2 = x.reshape(rows, din), gate.reshape(rows, din), res.reshape(rows, dout)
    tr = _row_tile(rows)
    grid = (pl.cdiv(rows, tr),)
    out = pl.pallas_call(
        _gated_linear_residual_kernel,
        out_shape=jax.ShapeDtypeStruct((rows, dout), res.dtype),
        grid_spec=pltpu.PrefetchScalarGridSpec(
            num_scalar_prefetch=0, grid=grid,
            in_specs=[pl.BlockSpec((tr, din), lambda i: (i, 0)),
                      pl.BlockSpec((tr, din), lambda i: (i, 0)),
                      pl.BlockSpec((tr, dout), lambda i: (i, 0)),
                      pl.BlockSpec((din, dout), lambda i: (0, 0)),
                      pl.BlockSpec((1, dout), lambda i: (0, 0))],
            out_specs=pl.BlockSpec((tr, dout), lambda i: (i, 0))),
        compiler_params=_compiler_params(("parallel",)),
    )(x2, g2, r2, w, b.reshape(1, dout))
    return out.reshape(shp)


# ----------------------------------------------------------------------------
# Flash-style multi-head attention with additive bias (bias reused across rows
# through the index_map -- never broadcast in HBM).
# ----------------------------------------------------------------------------

def _mha_kernel(q_ref, k_ref, v_ref, bias_ref, o_ref, m_sc, l_sc, acc_sc,
                *, heads, dh, scale):
    kv = pl.program_id(1)

    @pl.when(kv == 0)
    def _init():
        m_sc[...] = jnp.full_like(m_sc, -1e30)
        l_sc[...] = jnp.zeros_like(l_sc)
        acc_sc[...] = jnp.zeros_like(acc_sc)

    q = q_ref[0]            # (Nq, H*Dh)
    k = k_ref[0]            # (TK, H*Dh)
    v = v_ref[0]
    bias = bias_ref[0]      # (H, Nq, TK)

    for h in range(heads):
        sl = slice(h * dh, (h + 1) * dh)
        qh = q[:, sl].astype(jnp.bfloat16)
        kh = k[:, sl].astype(jnp.bfloat16)
        vh = v[:, sl].astype(jnp.bfloat16)
        s = jax.lax.dot_general(qh, kh, (((1,), (1,)), ((), ())),
                                preferred_element_type=jnp.float32) * scale + bias[h]
        m_prev = m_sc[h]                                         # (Nq, 1)
        m_new = jnp.maximum(m_prev, jnp.max(s, axis=-1, keepdims=True))
        alpha = jnp.exp(m_prev - m_new)
        p = jnp.exp(s - m_new)
        l_sc[h] = alpha * l_sc[h] + jnp.sum(p, axis=-1, keepdims=True)
        acc_sc[h] = alpha * acc_sc[h] + jnp.dot(p.astype(jnp.bfloat16), vh,
                                                preferred_element_type=jnp.float32)
        m_sc[h] = m_new

    @pl.when(kv == pl.num_programs(1) - 1)
    def _finalize():
        for h in range(heads):
            sl = slice(h * dh, (h + 1) * dh)
            inv = pl.reciprocal(l_sc[h], approx=True)            # (Nq, 1)
            o_ref[0, :, sl] = (acc_sc[h] * inv).astype(o_ref.dtype)


@functools.partial(jax.jit, static_argnames=("heads", "dh", "rows_per_bias"))
def pallas_mha(q, k, v, bias, *, heads, dh, rows_per_bias):
    """q,k,v: (G, N, H*Dh); bias: (G // rows_per_bias, H, N, N) -> (G, N, H*Dh)."""
    G, N, HD = q.shape
    scale = 1.0 / (dh ** 0.5)
    tk = 256 if (N > 256 and N % 256 == 0) else N
    nkv = pl.cdiv(N, tk)
    rb = rows_per_bias
    out = pl.pallas_call(
        functools.partial(_mha_kernel, heads=heads, dh=dh, scale=scale),
        out_shape=jax.ShapeDtypeStruct((G, N, HD), q.dtype),
        grid_spec=pltpu.PrefetchScalarGridSpec(
            num_scalar_prefetch=0,
            grid=(G, nkv),
            in_specs=[pl.BlockSpec((1, N, HD), lambda g, kv: (g, 0, 0)),
                      pl.BlockSpec((1, tk, HD), lambda g, kv: (g, kv, 0)),
                      pl.BlockSpec((1, tk, HD), lambda g, kv: (g, kv, 0)),
                      pl.BlockSpec((1, heads, N, tk),
                                   lambda g, kv: (g // rb, 0, 0, kv))],
            out_specs=pl.BlockSpec((1, N, HD), lambda g, kv: (g, 0, 0)),
            scratch_shapes=[pltpu.VMEM((heads, N, 1), jnp.float32),
                            pltpu.VMEM((heads, N, 1), jnp.float32),
                            pltpu.VMEM((heads, N, dh), jnp.float32)]),
        compiler_params=_compiler_params(("parallel", "arbitrary")),
    )(q, k, v, bias)
    return out


# ----------------------------------------------------------------------------
# Outer-product-mean module kernel: pair[i,j,:] += vec(a_i (x) b_j) @ Wo
# (lane-expanded a/b come straight out of the fused LN+Linear projection)
# ----------------------------------------------------------------------------

def _opm_kernel(a_ref, b_ref, r_ref, w_ref, wb_ref, o_ref):
    a = a_ref[0].astype(jnp.float32)            # (TI, c*c)
    b = b_ref[0].astype(jnp.float32)            # (N,  c*c)
    op = (a[:, None, :] * b[None, :, :]).astype(jnp.bfloat16)   # (TI, N, c*c)
    ti, n, c2 = op.shape
    y = jnp.dot(op.reshape(ti * n, c2), w_ref[...].astype(jnp.bfloat16),
                preferred_element_type=jnp.float32) + wb_ref[...]
    y = y.reshape(ti, n, -1)
    o_ref[0] = (r_ref[0].astype(jnp.float32) + y).astype(o_ref.dtype)


@jax.jit
def pallas_opm(a_exp, b_exp, pair, w, b):
    B, N, c2 = a_exp.shape
    P = pair.shape[-1]
    ti = N if N <= 128 else 64
    grid = (B, pl.cdiv(N, ti))
    return pl.pallas_call(
        _opm_kernel,
        out_shape=jax.ShapeDtypeStruct((B, N, N, P), pair.dtype),
        grid_spec=pltpu.PrefetchScalarGridSpec(
            num_scalar_prefetch=0, grid=grid,
            in_specs=[pl.BlockSpec((1, ti, c2), lambda bi, ii: (bi, ii, 0)),
                      pl.BlockSpec((1, N, c2), lambda bi, ii: (bi, 0, 0)),
                      pl.BlockSpec((1, ti, N, P), lambda bi, ii: (bi, ii, 0, 0)),
                      pl.BlockSpec((c2, P), lambda bi, ii: (0, 0)),
                      pl.BlockSpec((1, P), lambda bi, ii: (0, 0))],
            out_specs=pl.BlockSpec((1, ti, N, P), lambda bi, ii: (bi, ii, 0, 0))),
        compiler_params=_compiler_params(("parallel", "parallel")),
    )(a_exp, b_exp, pair, w, b.reshape(1, P))


# ----------------------------------------------------------------------------
# Triangle multiplication kernels
# ----------------------------------------------------------------------------

def _tri_gates_kernel(x_ref, g_ref, b_ref, w_ref, wb_ref, a_ref, bb_ref, gate_ref, *, tc):
    xn = _ln_f32(x_ref[...], g_ref, b_ref)
    y = jnp.dot(xn.astype(jnp.bfloat16), w_ref[...].astype(jnp.bfloat16),
                preferred_element_type=jnp.float32) + wb_ref[...]
    a_ref[...] = (jax.nn.sigmoid(y[:, :tc]) * y[:, tc:2 * tc]).astype(a_ref.dtype)
    bb_ref[...] = (jax.nn.sigmoid(y[:, 2 * tc:3 * tc]) * y[:, 3 * tc:4 * tc]).astype(bb_ref.dtype)
    gate_ref[...] = jax.nn.sigmoid(y[:, 4 * tc:]).astype(gate_ref.dtype)


@functools.partial(jax.jit, static_argnames=("tc",))
def pallas_tri_gates(pair, gamma, beta, w, wb, *, tc):
    B, N, _, P = pair.shape
    rows = B * N * N
    total = w.shape[1]
    x2 = pair.reshape(rows, P)
    tr = _row_tile(rows)
    grid = (pl.cdiv(rows, tr),)
    a, b, g = pl.pallas_call(
        functools.partial(_tri_gates_kernel, tc=tc),
        out_shape=(jax.ShapeDtypeStruct((rows, tc), pair.dtype),
                   jax.ShapeDtypeStruct((rows, tc), pair.dtype),
                   jax.ShapeDtypeStruct((rows, P), pair.dtype)),
        grid_spec=pltpu.PrefetchScalarGridSpec(
            num_scalar_prefetch=0, grid=grid,
            in_specs=[pl.BlockSpec((tr, P), lambda i: (i, 0)),
                      pl.BlockSpec((1, P), lambda i: (0, 0)),
                      pl.BlockSpec((1, P), lambda i: (0, 0)),
                      pl.BlockSpec((P, total), lambda i: (0, 0)),
                      pl.BlockSpec((1, total), lambda i: (0, 0))],
            out_specs=(pl.BlockSpec((tr, tc), lambda i: (i, 0)),
                       pl.BlockSpec((tr, tc), lambda i: (i, 0)),
                       pl.BlockSpec((tr, P), lambda i: (i, 0)))),
        compiler_params=_compiler_params(("parallel",)),
    )(x2, gamma.reshape(1, P), beta.reshape(1, P), w, wb.reshape(1, total))
    return (a.reshape(B, N, N, tc), b.reshape(B, N, N, tc), g.reshape(B, N, N, P))


def _tri_contract_kernel(a_ref, b_ref, o_ref, *, incoming):
    a = a_ref[0].astype(jnp.bfloat16)
    b = b_ref[0].astype(jnp.bfloat16)
    if incoming:
        t = jnp.einsum("cki,ckj->cij", a, b, preferred_element_type=jnp.float32)
    else:
        t = jnp.einsum("cik,cjk->cij", a, b, preferred_element_type=jnp.float32)
    o_ref[0] = t.astype(o_ref.dtype)


@functools.partial(jax.jit, static_argnames=("incoming",))
def pallas_tri_contract(a, b, *, incoming):
    """a, b: (B, C, N, N) channel-first -> (B, C, N, N) f32 contraction result."""
    B, C, N, _ = a.shape
    ti = N if N <= 256 else 128
    grid = (B, pl.cdiv(N, ti))
    if incoming:
        a_spec = pl.BlockSpec((1, C, N, ti), lambda bi, ii: (bi, 0, 0, ii))
    else:
        a_spec = pl.BlockSpec((1, C, ti, N), lambda bi, ii: (bi, 0, ii, 0))
    return pl.pallas_call(
        functools.partial(_tri_contract_kernel, incoming=incoming),
        out_shape=jax.ShapeDtypeStruct((B, C, N, N), jnp.float32),
        grid_spec=pltpu.PrefetchScalarGridSpec(
            num_scalar_prefetch=0, grid=grid,
            in_specs=[a_spec,
                      pl.BlockSpec((1, C, N, N), lambda bi, ii: (bi, 0, 0, 0))],
            out_specs=pl.BlockSpec((1, C, ti, N), lambda bi, ii: (bi, 0, ii, 0))),
        compiler_params=_compiler_params(("parallel", "parallel")),
    )(a, b)


def _tri_mul_out_kernel(t_ref, gate_ref, r_ref, g_ref, b_ref, w_ref, wb_ref, o_ref):
    tn = _ln_f32(t_ref[...], g_ref, b_ref)
    y = jnp.dot(tn.astype(jnp.bfloat16), w_ref[...].astype(jnp.bfloat16),
                preferred_element_type=jnp.float32) + wb_ref[...]
    o_ref[...] = (r_ref[...].astype(jnp.float32)
                  + gate_ref[...].astype(jnp.float32) * y).astype(o_ref.dtype)


@jax.jit
def pallas_tri_mul_out(t, gate, pair, gamma, beta, w, b):
    B, N, _, P = pair.shape
    tc = t.shape[-1]
    rows = B * N * N
    t2, g2, r2 = t.reshape(rows, tc), gate.reshape(rows, P), pair.reshape(rows, P)
    tr = _row_tile(rows)
    grid = (pl.cdiv(rows, tr),)
    out = pl.pallas_call(
        _tri_mul_out_kernel,
        out_shape=jax.ShapeDtypeStruct((rows, P), pair.dtype),
        grid_spec=pltpu.PrefetchScalarGridSpec(
            num_scalar_prefetch=0, grid=grid,
            in_specs=[pl.BlockSpec((tr, tc), lambda i: (i, 0)),
                      pl.BlockSpec((tr, P), lambda i: (i, 0)),
                      pl.BlockSpec((tr, P), lambda i: (i, 0)),
                      pl.BlockSpec((1, tc), lambda i: (0, 0)),
                      pl.BlockSpec((1, tc), lambda i: (0, 0)),
                      pl.BlockSpec((tc, P), lambda i: (0, 0)),
                      pl.BlockSpec((1, P), lambda i: (0, 0))],
            out_specs=pl.BlockSpec((tr, P), lambda i: (i, 0))),
        compiler_params=_compiler_params(("parallel",)),
    )(t2, g2, r2, gamma.reshape(1, tc), beta.reshape(1, tc), w, b.reshape(1, P))
    return out.reshape(B, N, N, P)


# ----------------------------------------------------------------------------
# Evoformer blocks (composed from the Pallas kernels above; thin JAX glue)
# ----------------------------------------------------------------------------

def node_update_block(p, cfg, node, pair):
    B, N, D = node.shape
    H, Dh = cfg["node_attn_heads"], cfg["node_dim_head"]

    q, k, v = pallas_ln_multilinear(
        node, p["attn_ln_node_g"], p["attn_ln_node_b"], p["w_qkv"], p["b_qkv"],
        widths=(H * Dh, H * Dh, H * Dh), activations=("none", "none", "none"))
    (bias,) = pallas_ln_multilinear(
        pair, p["attn_ln_pair_g"], p["attn_ln_pair_b"], p["w_bias"], p["b_bias"],
        widths=(H,), activations=("none",))
    bias = jnp.moveaxis(bias, 3, 1)                         # (B, H, N, N)
    attn = pallas_mha(q, k, v, bias, heads=H, dh=Dh, rows_per_bias=1)
    node = pallas_linear_residual(attn, node, p["wo"], p["bo"])
    node = pallas_transition(node, p["ff_ln_g"], p["ff_ln_b"],
                             p["ff_w1"], p["ff_b1"], p["ff_w2"], p["ff_b2"])
    return node


def outer_product_module(p, node, pair):
    c2 = p["wo"].shape[0]
    a_exp, b_exp = pallas_ln_multilinear(
        node, p["ln_g"], p["ln_b"], p["w_ab"], p["b_ab"],
        widths=(c2, c2), activations=("none", "none"))
    return pallas_opm(a_exp, b_exp, pair, p["wo"], p["bo"])


def tri_mul_module(p, pair, incoming):
    tc = p["wo"].shape[0]
    a, b, g = pallas_tri_gates(pair, p["ln_g"], p["ln_b"],
                               p["w_gates"], p["b_gates"], tc=tc)
    a_t = jnp.transpose(a, (0, 3, 1, 2))    # (B, tc, N, N)
    b_t = jnp.transpose(b, (0, 3, 1, 2))
    t = pallas_tri_contract(a_t, b_t, incoming=incoming)
    t = jnp.transpose(t, (0, 2, 3, 1))      # (B, N, N, tc)
    return pallas_tri_mul_out(t, g, pair, p["ln_mid_g"], p["ln_mid_b"], p["wo"], p["bo"])


def tri_attn_module(p, cfg, pair, ending):
    B, N, _, P = pair.shape
    H, Dh = cfg["edge_attn_heads"], cfg["edge_dim_head"]
    z = jnp.swapaxes(pair, 1, 2) if ending else pair
    q, k, v, g, bias = pallas_ln_multilinear(
        z, p["ln_g"], p["ln_b"], p["w_all"], p["b_all"],
        widths=(H * Dh, H * Dh, H * Dh, H * Dh, H),
        activations=("none", "none", "none", "sigmoid", "none"))
    bias = jnp.moveaxis(bias, 3, 1)                         # (B, H, N, N), shared by rows
    qf = q.reshape(B * N, N, H * Dh)
    kf = k.reshape(B * N, N, H * Dh)
    vf = v.reshape(B * N, N, H * Dh)
    attn = pallas_mha(qf, kf, vf, bias, heads=H, dh=Dh, rows_per_bias=N)
    attn = attn.reshape(B, N, N, H * Dh)
    o = pallas_gated_linear_residual(attn, g, z, p["wo"], p["bo"])
    return jnp.swapaxes(o, 1, 2) if ending else o


def pair_update_block(p, cfg, node, pair):
    pair = outer_product_module(p["opm"], node, pair)
    if cfg["do_tri_mul"]:
        pair = tri_mul_module(p["tri_mul_out"], pair, incoming=False)
        pair = tri_mul_module(p["tri_mul_in"], pair, incoming=True)
    if cfg["do_tri_attn"]:
        pair = tri_attn_module(p["tri_attn_start"], cfg, pair, ending=False)
        pair = tri_attn_module(p["tri_attn_end"], cfg, pair, ending=True)
    pair = pallas_transition(pair, p["ff_ln_g"], p["ff_ln_b"],
                             p["ff_w1"], p["ff_b1"], p["ff_w2"], p["ff_b2"])
    return pair


def evoformer_forward(params, cfg, node_feats, edge_feats, adj_mask=None):
    # TODO(synk): adj_mask=None path only (masked attention not implemented).
    node, pair = node_feats, edge_feats
    for lp in params["layers"]:
        node = node_update_block(lp["node"], cfg, node, pair)
        pair = pair_update_block(lp["pair"], cfg, node, pair)
    (node,) = pallas_ln_multilinear(
        node, params["node_proj_ln_g"], params["node_proj_ln_b"],
        params["node_proj_w"], params["node_proj_b"],
        widths=(int(params["node_proj_w"].shape[1]),), activations=("none",))
    (pair,) = pallas_ln_multilinear(
        pair, params["edge_proj_ln_g"], params["edge_proj_ln_b"],
        params["edge_proj_w"], params["edge_proj_b"],
        widths=(int(params["edge_proj_w"].shape[1]),), activations=("none",))
    return node, pair


# ----------------------------------------------------------------------------
# Deterministic parameter initialization (weights pre-concatenated for fusion)
# ----------------------------------------------------------------------------

def _init_linear(key, din, dout, scale=0.02):
    kw, kb = jax.random.split(key)
    w = scale * jax.random.normal(kw, (din, dout), jnp.float32)
    b = scale * jax.random.normal(kb, (dout,), jnp.float32)
    return w, b


def _ln(d):
    return jnp.ones((d,), jnp.float32), jnp.zeros((d,), jnp.float32)


def init_node_block_params(key, D, P, H, Dh, ff_mult):
    ks = jax.random.split(key, 7)
    p = {}
    p["attn_ln_node_g"], p["attn_ln_node_b"] = _ln(D)
    p["attn_ln_pair_g"], p["attn_ln_pair_b"] = _ln(P)
    wq, bq = _init_linear(ks[0], D, H * Dh)
    wk, bk = _init_linear(ks[1], D, H * Dh)
    wv, bv = _init_linear(ks[2], D, H * Dh)
    p["w_qkv"] = jnp.concatenate([wq, wk, wv], axis=1)
    p["b_qkv"] = jnp.concatenate([bq, bk, bv])
    p["w_bias"], p["b_bias"] = _init_linear(ks[3], P, H)
    p["wo"], p["bo"] = _init_linear(ks[4], H * Dh, D)
    p["ff_ln_g"], p["ff_ln_b"] = _ln(D)
    p["ff_w1"], p["ff_b1"] = _init_linear(ks[5], D, D * ff_mult)
    p["ff_w2"], p["ff_b2"] = _init_linear(ks[6], D * ff_mult, D)
    return p


def init_opm_params(key, D, P, c):
    ks = jax.random.split(key, 3)
    p = {}
    p["ln_g"], p["ln_b"] = _ln(D)
    wl, bl = _init_linear(ks[0], D, c)
    wr, br = _init_linear(ks[1], D, c)
    # lane-expanded projection weights so the OPM kernel reads a dense c*c slab
    p["w_ab"] = jnp.concatenate([jnp.repeat(wl, c, axis=1), jnp.tile(wr, (1, c))], axis=1)
    p["b_ab"] = jnp.concatenate([jnp.repeat(bl, c), jnp.tile(br, c)])
    p["wo"], p["bo"] = _init_linear(ks[2], c * c, P)
    return p


def init_tri_mul_params(key, P, tc):
    ks = jax.random.split(key, 6)
    p = {}
    p["ln_g"], p["ln_b"] = _ln(P)
    wa_g, ba_g = _init_linear(ks[0], P, tc)
    wa_p, ba_p = _init_linear(ks[1], P, tc)
    wb_g, bb_g = _init_linear(ks[2], P, tc)
    wb_p, bb_p = _init_linear(ks[3], P, tc)
    wg, bg = _init_linear(ks[4], P, P)
    p["w_gates"] = jnp.concatenate([wa_g, wa_p, wb_g, wb_p, wg], axis=1)
    p["b_gates"] = jnp.concatenate([ba_g, ba_p, bb_g, bb_p, bg])
    p["ln_mid_g"], p["ln_mid_b"] = _ln(tc)
    p["wo"], p["bo"] = _init_linear(ks[5], tc, P)
    return p


def init_tri_attn_params(key, P, H, Dh):
    ks = jax.random.split(key, 6)
    p = {}
    p["ln_g"], p["ln_b"] = _ln(P)
    wq, bq = _init_linear(ks[0], P, H * Dh)
    wk, bk = _init_linear(ks[1], P, H * Dh)
    wv, bv = _init_linear(ks[2], P, H * Dh)
    wg, bg = _init_linear(ks[3], P, H * Dh)
    wb, bb = _init_linear(ks[4], P, H)
    p["w_all"] = jnp.concatenate([wq, wk, wv, wg, wb], axis=1)
    p["b_all"] = jnp.concatenate([bq, bk, bv, bg, bb])
    p["wo"], p["bo"] = _init_linear(ks[5], H * Dh, P)
    return p


def init_pair_block_params(key, cfg):
    P, D = cfg["edge_dim"], cfg["node_dim"]
    H, Dh = cfg["edge_attn_heads"], cfg["edge_dim_head"]
    tc, ff_mult, opm_c = cfg["triangle_mul_dim"], cfg["edge_ff_mult"], cfg["opm_hidden"]
    ks = jax.random.split(key, 7)
    p = {}
    p["opm"] = init_opm_params(ks[0], D, P, opm_c)
    p["tri_mul_out"] = init_tri_mul_params(ks[1], P, tc)
    p["tri_mul_in"] = init_tri_mul_params(ks[2], P, tc)
    p["tri_attn_start"] = init_tri_attn_params(ks[3], P, H, Dh)
    p["tri_attn_end"] = init_tri_attn_params(ks[4], P, H, Dh)
    p["ff_ln_g"], p["ff_ln_b"] = _ln(P)
    p["ff_w1"], p["ff_b1"] = _init_linear(ks[5], P, P * ff_mult)
    p["ff_w2"], p["ff_b2"] = _init_linear(ks[6], P * ff_mult, P)
    return p


def init_params(key, cfg):
    keys = jax.random.split(key, cfg["depth"] + 1)
    layers = []
    for i in range(cfg["depth"]):
        kn, kp = jax.random.split(keys[i])
        layers.append({
            "node": init_node_block_params(kn, cfg["node_dim"], cfg["edge_dim"],
                                           cfg["node_attn_heads"], cfg["node_dim_head"],
                                           cfg["node_ff_mult"]),
            "pair": init_pair_block_params(kp, cfg),
        })
    params = {"layers": layers}
    kn, kp = jax.random.split(keys[-1])
    params["node_proj_ln_g"], params["node_proj_ln_b"] = _ln(cfg["node_dim"])
    params["node_proj_w"], params["node_proj_b"] = _init_linear(kn, cfg["node_dim"], cfg["node_out"])
    params["edge_proj_ln_g"], params["edge_proj_ln_b"] = _ln(cfg["edge_dim"])
    params["edge_proj_w"], params["edge_proj_b"] = _init_linear(kp, cfg["edge_dim"], cfg["edge_out"])
    return params


# ----------------------------------------------------------------------------
# Main
# ----------------------------------------------------------------------------

if __name__ == "__main__":
    cfg = dict(
        depth=2,
        node_dim=32, edge_dim=32,
        node_out=16, edge_out=16,
        node_attn_heads=2, node_dim_head=16, node_ff_mult=2,
        edge_attn_heads=2, edge_dim_head=16, edge_ff_mult=2,
        triangle_mul_dim=16, opm_hidden=8,
        do_tri_mul=True, do_tri_attn=True,
    )

    key = jax.random.PRNGKey(0)
    k_node, k_edge, k_params = jax.random.split(key, 3)

    B, N = 1, 8
    node_feats = jax.random.normal(k_node, (B, N, cfg["node_dim"]), jnp.float32)
    edge_feats = jax.random.normal(k_edge, (B, N, N, cfg["edge_dim"]), jnp.float32)

    params = init_params(k_params, cfg)

    node_out, edge_out = evoformer_forward(params, cfg, node_feats, edge_feats, adj_mask=None)
    jax.block_until_ready((node_out, edge_out))

    assert node_out.shape == (B, N, cfg["node_out"])
    assert edge_out.shape == (B, N, N, cfg["edge_out"])
    print("KERNEL_OK")
</pallas_src>

<mosaic_0001>
module attributes {stable_mosaic.version = 11 : i64} {
  func.func @_ln_multilinear_kernel(%arg0: i32, %arg1: memref<8x32xf32, #tpu.memory_space<vmem>>, %arg2: memref<1x32xf32, #tpu.memory_space<vmem>>, %arg3: memref<1x32xf32, #tpu.memory_space<vmem>>, %arg4: memref<32x96xf32, #tpu.memory_space<vmem>>, %arg5: memref<1x96xf32, #tpu.memory_space<vmem>>, %arg6: memref<8x32xf32, #tpu.memory_space<vmem>>, %arg7: memref<8x32xf32, #tpu.memory_space<vmem>>, %arg8: memref<8x32xf32, #tpu.memory_space<vmem>>) attributes {dimension_semantics = [#tpu.dimension_semantics<parallel>], iteration_bounds = array<i64: 1>, scalar_prefetch = 0 : i64, scratch_operands = 0 : i64, tpu.core_type = #tpu.core_type<tc>, window_params = [{transform_indices = @transform_0, window_bounds = array<i64: 8, 32>}, {pipeline_mode = #tpu.pipeline_mode<synchronous>, transform_indices = @transform_1, window_bounds = array<i64: 1, 32>}, {pipeline_mode = #tpu.pipeline_mode<synchronous>, transform_indices = @transform_2, window_bounds = array<i64: 1, 32>}, {pipeline_mode = #tpu.pipeline_mode<synchronous>, transform_indices = @transform_3, window_bounds = array<i64: 32, 96>}, {pipeline_mode = #tpu.pipeline_mode<synchronous>, transform_indices = @transform_4, window_bounds = array<i64: 1, 96>}, {transform_indices = @transform_5, window_bounds = array<i64: 8, 32>}, {transform_indices = @transform_6, window_bounds = array<i64: 8, 32>}, {transform_indices = @transform_7, window_bounds = array<i64: 8, 32>}]} {
    %c0 = arith.constant 0 : index
    %c0_0 = arith.constant 0 : index
    %0 = vector.load %arg1[%c0, %c0_0] : memref<8x32xf32, #tpu.memory_space<vmem>>, vector<8x32xf32>
    %cst = arith.constant dense<0.000000e+00> : vector<8xf32>
    %1 = vector.multi_reduction <add>, %0, %cst [1] : vector<8x32xf32> to vector<8xf32>
    %2 = vector.shape_cast %1 : vector<8xf32> to vector<8x1xf32>
    %cst_1 = arith.constant 3.200000e+01 : f32
    %3 = vector.broadcast %cst_1 : f32 to vector<8x1xf32>
    %4 = arith.divf %2, %3 : vector<8x1xf32>
    %5 = vector.broadcast %4 : vector<8x1xf32> to vector<8x32xf32>
    %6 = arith.subf %0, %5 : vector<8x32xf32>
    %7 = arith.mulf %6, %6 : vector<8x32xf32>
    %cst_2 = arith.constant dense<0.000000e+00> : vector<8xf32>
    %8 = vector.multi_reduction <add>, %7, %cst_2 [1] : vector<8x32xf32> to vector<8xf32>
    %9 = vector.shape_cast %8 : vector<8xf32> to vector<8x1xf32>
    %cst_3 = arith.constant 3.200000e+01 : f32
    %10 = vector.broadcast %cst_3 : f32 to vector<8x1xf32>
    %11 = arith.divf %9, %10 : vector<8x1xf32>
    %12 = vector.broadcast %4 : vector<8x1xf32> to vector<8x32xf32>
    %13 = arith.subf %0, %12 : vector<8x32xf32>
    %cst_4 = arith.constant 9.99999974E-6 : f32
    %14 = vector.broadcast %cst_4 : f32 to vector<8x1xf32>
    %15 = arith.addf %11, %14 : vector<8x1xf32>
    %16 = math.rsqrt %15 : vector<8x1xf32>
    %17 = vector.broadcast %16 : vector<8x1xf32> to vector<8x32xf32>
    %18 = arith.mulf %13, %17 : vector<8x32xf32>
    %c0_5 = arith.constant 0 : index
    %c0_6 = arith.constant 0 : index
    %19 = vector.load %arg2[%c0_5, %c0_6] : memref<1x32xf32, #tpu.memory_space<vmem>>, vector<1x32xf32>
    %20 = vector.broadcast %19 : vector<1x32xf32> to vector<8x32xf32>
    %21 = arith.mulf %18, %20 : vector<8x32xf32>
    %c0_7 = arith.constant 0 : index
    %c0_8 = arith.constant 0 : index
    %22 = vector.load %arg3[%c0_7, %c0_8] : memref<1x32xf32, #tpu.memory_space<vmem>>, vector<1x32xf32>
    %23 = vector.broadcast %22 : vector<1x32xf32> to vector<8x32xf32>
    %24 = arith.addf %21, %23 : vector<8x32xf32>
    %25 = arith.truncf %24 : vector<8x32xf32> to vector<8x32xbf16>
    %c0_9 = arith.constant 0 : index
    %c0_10 = arith.constant 0 : index
    %26 = vector.load %arg4[%c0_9, %c0_10] : memref<32x96xf32, #tpu.memory_space<vmem>>, vector<32x96xf32>
    %27 = arith.truncf %26 : vector<32x96xf32> to vector<32x96xbf16>
    %cst_11 = arith.constant dense<0.000000e+00> : vector<8x96xf32>
    %28 = tpu.matmul %25, %27, %cst_11 {dimension_numbers = #tpu.dot_dimension_numbers<[1], [0], [0], [1], [0, 0, 1, 1], [], []>} : vector<8x32xbf16>, vector<32x96xbf16>, vector<8x96xf32> -> vector<8x96xf32>
    %c0_12 = arith.constant 0 : index
    %c0_13 = arith.constant 0 : index
    %29 = vector.load %arg5[%c0_12, %c0_13] : memref<1x96xf32, #tpu.memory_space<vmem>>, vector<1x96xf32>
    %30 = vector.broadcast %29 : vector<1x96xf32> to vector<8x96xf32>
    %31 = arith.addf %28, %30 : vector<8x96xf32>
    %32 = vector.extract_strided_slice %31 {offsets = [0, 0], sizes = [8, 32], strides = [1, 1]} : vector<8x96xf32> to vector<8x32xf32>
    %c0_14 = arith.constant 0 : index
    %c0_15 = arith.constant 0 : index
    %33 = vector.load %arg6[%c0_14, %c0_15] : memref<8x32xf32, #tpu.memory_space<vmem>>, vector<8x32xf32>
    tpu.vector_store %arg6[%c0_14, %c0_15], %32 {strides = array<i32>} : memref<8x32xf32, #tpu.memory_space<vmem>>, vector<8x32xf32>,
    %34 = vector.extract_strided_slice %31 {offsets = [0, 32], sizes = [8, 32], strides = [1, 1]} : vector<8x96xf32> to vector<8x32xf32>
    %c0_16 = arith.constant 0 : index
    %c0_17 = arith.constant 0 : index
    %35 = vector.load %arg7[%c0_16, %c0_17] : memref<8x32xf32, #tpu.memory_space<vmem>>, vector<8x32xf32>
    tpu.vector_store %arg7[%c0_16, %c0_17], %34 {strides = array<i32>} : memref<8x32xf32, #tpu.memory_space<vmem>>, vector<8x32xf32>,
    %36 = vector.extract_strided_slice %31 {offsets = [0, 64], sizes = [8, 32], strides = [1, 1]} : vector<8x96xf32> to vector<8x32xf32>
    %c0_18 = arith.constant 0 : index
    %c0_19 = arith.constant 0 : index
    %37 = vector.load %arg8[%c0_18, %c0_19] : memref<8x32xf32, #tpu.memory_space<vmem>>, vector<8x32xf32>
    tpu.vector_store %arg8[%c0_18, %c0_19], %36 {strides = array<i32>} : memref<8x32xf32, #tpu.memory_space<vmem>>, vector<8x32xf32>,
    return
  }
  func.func @transform_0(%arg0: i32) -> (i32, i32) {
    %c0_i32 = arith.constant 0 : i32
    %c0_i32_0 = arith.constant 0 : i32
    return %arg0, %c0_i32 : i32, i32
  }
  func.func @transform_1(%arg0: i32) -> (i32, i32) {
    %c0_i32 = arith.constant 0 : i32
    %c0_i32_0 = arith.constant 0 : i32
    %c0_i32_1 = arith.constant 0 : i32
    return %c0_i32, %c0_i32_0 : i32, i32
  }
  func.func @transform_2(%arg0: i32) -> (i32, i32) {
    %c0_i32 = arith.constant 0 : i32
    %c0_i32_0 = arith.constant 0 : i32
    %c0_i32_1 = arith.constant 0 : i32
    return %c0_i32, %c0_i32_0 : i32, i32
  }
  func.func @transform_3(%arg0: i32) -> (i32, i32) {
    %c0_i32 = arith.constant 0 : i32
    %c0_i32_0 = arith.constant 0 : i32
    %c0_i32_1 = arith.constant 0 : i32
    return %c0_i32, %c0_i32_0 : i32, i32
  }
  func.func @transform_4(%arg0: i32) -> (i32, i32) {
    %c0_i32 = arith.constant 0 : i32
    %c0_i32_0 = arith.constant 0 : i32
    %c0_i32_1 = arith.constant 0 : i32
    return %c0_i32, %c0_i32_0 : i32, i32
  }
  func.func @transform_5(%arg0: i32) -> (i32, i32) {
    %c0_i32 = arith.constant 0 : i32
    %c0_i32_0 = arith.constant 0 : i32
    return %arg0, %c0_i32 : i32, i32
  }
  func.func @transform_6(%arg0: i32) -> (i32, i32) {
    %c0_i32 = arith.constant 0 : i32
    %c0_i32_0 = arith.constant 0 : i32
    return %arg0, %c0_i32 : i32, i32
  }
  func.func @transform_7(%arg0: i32) -> (i32, i32) {
    %c0_i32 = arith.constant 0 : i32
    %c0_i32_0 = arith.constant 0 : i32
    return %arg0, %c0_i32 : i32, i32
  }
}

</mosaic_0001>

<bundles_post_ra>
// kernel: pallas_ln_multilinear.1
= control target key start
LH: loop header
LB: loop body
LE: loop exit
PB: predicated region body
PF: predicated region fallthrough
CT: control target
= control target key end

     0   :  { %13 = vsyncpa [#allocation3], 0  ;;  %s418_s0 = inlined_call_operand.vmem [shape: f32[8,32], index: 0, kind: input, shape index: {}]   ;;  %s419_s1 = inlined_call_operand.vmem [shape: f32[1,32], index: 1, kind: input, shape index: {}]   ;;  %s420_s2 = inlined_call_operand.vmem [shape: f32[1,32], index: 2, kind: input, shape index: {}]   ;;  %s421_s3 = inlined_call_operand.hbm [shape: f32[32,96], index: 3, kind: input, shape index: {}]   ;;  %s422_s4 = inlined_call_operand.vmem [shape: f32[1,96], index: 4, kind: input, shape index: {}]   ;;  %s423_s5 = inlined_call_operand.hbm [shape: f32[8,32], index: 5, kind: output, shape index: {0}]   ;;  %s424_s6 = inlined_call_operand.hbm [shape: f32[8,32], index: 6, kind: output, shape index: {1}]   ;;  %s425_s7 = inlined_call_operand.hbm [shape: f32[8,32], index: 7, kind: output, shape index: {2}]  }
   0x1   :  { %14 = vsyncpa [#allocation4], 0 }
   0x2   :  { %15 = vsyncpa [#allocation7], 0  ;;  %s302_s24 = smov [#allocation2]   ;;  %s208_s28 = scalar_lea.hbm %s421_s3, 512 }
   0x3   :  { %s27_s25 = sshll.u32 %s302_s24, 4  ;;  %p209_p0 = scmp.ne.s32.totalorder %s421_s3, %s208_s28  ;;  %s28_s25 = int_to_ptr.vmem [resolvable:$true] %s27_s25 }
   0x4   :  { %p212_p1 = scmp.lt.u32.totalorder %s208_s28, %s421_s3 }
   0x6   :  { %p214_p2 = pnand %p212_p1, %p209_p0 }
   0x8   :  { %217 = shalt.err (!%p214_p2)
}
   0x9   :  { %s218_s10 = scalar_lea.vmem %s28_s25, 512  ;;  %p223_p4 = scmp.lt.s32.totalorder %s28_s25, %s28_s25 }
   0xa   :  { %p219_p3 = scmp.ne.s32.totalorder %s28_s25, %s218_s10  ;;  %p224_p5 = scmp.lt.s32.totalorder %s218_s10, %s218_s10 }
   0xc   :  { %p225_p6 = por %p224_p5, %p223_p4 }
   0xe   :  { %p226_p7 = pnand %p225_p6, %p219_p3 }
  0x10   :  { %229 = shalt.err (!%p226_p7)
}
  0x11   :  { %s303_s11 = smov 128   ;;  %s304_s12 = smov 8  }
  0x12   :  { %33 = dma.hbm_to_vmem [thread:$0]  %s421_s3, 512, %s28_s25, [#allocation3], %s303_s11, %s303_s11, %s304_s12  }
  0x13   :  { %296 = dma.done.wait [#allocation3], 512  }
  0x14   :  { %297 = vsyncadd [#allocation3], 4294966784  ;;  %vm41_vm0 = vcmask 261120   ;;  %v40_v0 = vld [vmem:[%s418_s0] sm:$0xff]  ;;  %v74_v8 = vld [vmem:[#allocation2 + $0x8] sm:$0xff]  ;;  %v305_v10 = vmov 0.0  }
  0x15   :  { %v42_v1 = vsel %vm41_vm0, %v40_v0, 0.0  ;;  %v73_v7 = vld [vmem:[#allocation2] sm:$0xff]  ;;  %188 = vmatprep.subr.bf16.mxu0 %v305_v10  ;;  %v75_v11 = vld [vmem:[#allocation2 + $0x10] sm:$0xff]  ;;  %v76_v12 = vld [vmem:[#allocation2 + $0x18] sm:$0xff]  ;;  %vm306_vm1 = vmmov 0   ;;  %s307_s21 = smov [#allocation5]  }
  0x16   :  { %43 = vadd.xlane.f32.xlu0 %v42_v1  ;;  %v77_v9 = vpack.c.bf16 %v74_v8, %v73_v7  ;;  %v78_v13 = vpack.c.bf16 %v76_v12, %v75_v11  ;;  %192 = vmatprep.mubr.msk.bf16.mxu0 %vm306_vm1, %v305_v10  ;;  %v181_v18 = vld [vmem:[%s419_s1] ss:$0 sm:$0xff]  ;;  %s145_s22 = sshll.u32 %s307_s21, 4  ;;  %s308_s1 = smov 96   ;;  %s146_s22 = int_to_ptr.vmem [resolvable:$true] %s145_s22 }
  0x17   :  { %v182_v20 = vld [vmem:[%s420_s2] ss:$0 sm:$0xff]  ;;  %s230_s2 = scalar_lea.vmem %s146_s22, 128  ;;  %p235_p9 = scmp.lt.s32.totalorder %s146_s22, %s146_s22 }
  0x18   :  { %189 = vmatpush3.bf16.msra.mxu0 %v77_v9  ;;  %v183_v24 = vld [vmem:[%s422_s4] ss:$0 sm:$0xff]  ;;  %p231_p8 = scmp.ne.s32.totalorder %s146_s22, %s230_s2  ;;  %p236_p10 = scmp.lt.s32.totalorder %s230_s2, %s230_s2 }
  0x19   :  { %190 = vmatprep.subr.bf16.mxu0 %v305_v10 }
  0x1a   :  { %p237_p11 = por %p236_p10, %p235_p9 }
  0x1c   :  { %191 = vmatpush3.bf16.msra.mxu0 %v78_v13  ;;  %p238_p12 = pnand %p237_p11, %p231_p8 }
  0xa3   :  { %v44_v2 = vpop.xlane.xlu0 %43 }
  0xa4   :  { %v46_v3 = vmul.f32 0.03125, %v44_v2 }
  0xa6   :  { %v47_v4 = vsub.f32 %v40_v0, %v46_v3 }
  0xa8   :  { %v48_v5 = vmul.f32 %v47_v4, %v47_v4 }
  0xaa   :  { %v49_v6 = vsel %vm41_vm0, %v48_v5, 0.0 }
  0xab   :  { %50 = vadd.xlane.f32.xlu0 %v49_v6 }
 0x138   :  { %v51_v14 = vpop.xlane.xlu0 %50 }
 0x139   :  { %v52_v15 = vmul.f32 0.03125, %v51_v14 }
 0x13b   :  { %v53_v16 = vadd.f32 1e-05, %v52_v15 }
 0x13d   :  { %206 = vrsqrt.f32 %v53_v16 }
 0x147   :  { %v207_v17 = vpop.eup %206 }
 0x148   :  { %v55_v19 = vmul.f32 %v207_v17, %v47_v4 }
 0x14a   :  { %v63_v21 = vmul.f32 %v181_v18, %v55_v19 }
 0x14c   :  { %v71_v22 = vadd.f32 %v182_v20, %v63_v21 }
 0x14e   :  { %v72_v23 = vpack.c.bf16 %v71_v22, %v71_v22 }
 0x150   :  { %193 = vmatmul.mubr.msk.bf16.vlgmr.msra.gmra.mrb[0].mxu0 %vm41_vm0, %v72_v23 }
 0x223   :  { %v123_v25 = vpop.f32.mrb[0].mxu0 }
 0x224   :  { %v124_v26 = vadd.f32 %v183_v24, %v123_v25  ;;  %v194_v27 = vpop.f32.mrb[1].mxu0 }
 0x225   :  { %v126_v28 = vpop.f32.mrb[2].mxu0 }
 0x226   :  { %129 = vst.msk [vmem:[#allocation5] sm:$0xff] %vm41_vm0, %v124_v26  ;;  %131 = vrot.lane.b32.xlu1 %v124_v26, %s308_s1  ;;  %v195_v29 = vpop.f32.mrb[3].mxu0 }
 0x227   :  { %241 = shalt.err (!%p238_p12)
}
 0x228   :  { %s242_s24 = scalar_lea.hbm %s423_s5, 128 }
 0x229   :  { %p243_p13 = scmp.ne.s32.totalorder %s423_s5, %s242_s24  ;;  %p246_p0 = scmp.lt.u32.totalorder %s242_s24, %s423_s5 }
 0x22b   :  { %p248_p1 = pnand %p246_p0, %p243_p13 }
 0x22d   :  { %251 = shalt.err (!%p248_p1)
}
 0x22e   :  { %148 = dma.vmem_to_hbm [thread:$0]  %s146_s22, 128, %s423_s5, [#allocation4]  }
 0x22f   :  { %s309_s8 = smov 64   ;;  %s310_s9 = smov [#allocation6]  }
 0x230   :  { %135 = vrot.lane.b32.xlu1 %v124_v26, %s309_s8  ;;  %s155_s10 = sshll.u32 %s310_s9, 4  ;;  %s311_s11 = smov [#allocation8]   ;;  %s156_s10 = int_to_ptr.vmem [resolvable:$true] %s155_s10 }
 0x231   :  { %s165_s12 = sshll.u32 %s311_s11, 4  ;;  %s252_s13 = scalar_lea.vmem %s156_s10, 128  ;;  %s166_s12 = int_to_ptr.vmem [resolvable:$true] %s165_s12 }
 0x232   :  { %p253_p2 = scmp.ne.s32.totalorder %s156_s10, %s252_s13  ;;  %p257_p3 = scmp.lt.s32.totalorder %s156_s10, %s156_s10 }
 0x233   :  { %p258_p4 = scmp.lt.s32.totalorder %s252_s13, %s252_s13 }
 0x235   :  { %p259_p5 = por %p258_p4, %p257_p3 }
 0x237   :  { %p260_p6 = pnand %p259_p5, %p253_p2 }
 0x298   :  { %v132_v30 = vpop.permute.xlu1 %131 }
 0x299   :  { %134 = vst.msk [vmem:[#allocation6] sm:$0xff] %vm41_vm0, %v132_v30 }
 0x29a   :  { %263 = shalt.err (!%p260_p6)
}
 0x29b   :  { %s264_s5 = scalar_lea.hbm %s424_s6, 128 }
 0x29c   :  { %p265_p7 = scmp.ne.s32.totalorder %s424_s6, %s264_s5  ;;  %p268_p8 = scmp.lt.u32.totalorder %s264_s5, %s424_s6 }
 0x29e   :  { %p270_p9 = pnand %p268_p8, %p265_p7 }
 0x2a0   :  { %273 = shalt.err (!%p270_p9)
}
 0x2a1   :  { %158 = dma.vmem_to_hbm [thread:$0]  %s156_s10, 128, %s424_s6, [#allocation7]  }
 0x2a2   :  { %v136_v31 = vpop.permute.xlu1 %135  ;;  %s274_s20 = scalar_lea.vmem %s166_s12, 128  ;;  %p279_p11 = scmp.lt.s32.totalorder %s166_s12, %s166_s12 }
 0x2a3   :  { %138 = vst.msk [vmem:[#allocation8] sm:$0xff] %vm41_vm0, %v136_v31  ;;  %p275_p10 = scmp.ne.s32.totalorder %s166_s12, %s274_s20  ;;  %p280_p12 = scmp.lt.s32.totalorder %s274_s20, %s274_s20 }
 0x2a5   :  { %p281_p13 = por %p280_p12, %p279_p11 }
 0x2a7   :  { %p282_p0 = pnand %p281_p13, %p275_p10 }
 0x2a9   :  { %285 = shalt.err (!%p282_p0)
}
 0x2aa   :  { %s286_s1 = scalar_lea.hbm %s425_s7, 128 }
 0x2ab   :  { %p287_p1 = scmp.ne.s32.totalorder %s425_s7, %s286_s1  ;;  %p290_p2 = scmp.lt.u32.totalorder %s286_s1, %s425_s7 }
 0x2ad   :  { %p292_p3 = pnand %p290_p2, %p287_p1 }
 0x2af   :  { %295 = shalt.err (!%p292_p3)
}
 0x2b0   :  { %168 = dma.vmem_to_hbm [thread:$0]  %s166_s12, 128, %s425_s7, [#allocation7]  }
 0x2b1   :  { %298 = dma.done.wait [#allocation4], 128  }
 0x2b2   :  { %299 = vsyncadd [#allocation4], 4294967168 }
 0x2b3   :  { %300 = dma.done.wait [#allocation7], 256  }
 0x2b4   :  { %301 = vsyncadd [#allocation7], 4294967040 }
 0x2b5   :  { %178 = vsyncpa [#allocation3], 1 }
 0x2b6   :  { %179 = vsyncpa [#allocation4], 1 }
 0x2b7   :  { %180 = vsyncpa [#allocation7], 1 }

</bundles_post_ra>
